<compile_context>
chip_gen: v5e
topology: v5e:2x2
jax: 0.10.0
libtpu: 0.0.40
codegen_flags: <defaults>
</compile_context>

<pallas_src>
import math

import jax
import jax.numpy as jnp
from jax import lax
from jax.experimental import pallas as pl
from jax.experimental.pallas import tpu as pltpu


_SUBLANE_PACK = {4: 8, 2: 16, 1: 32}  # out_dtype itemsize -> sublane packing


def _cdiv(a: int, b: int) -> int:
    return -(-a // b)


def _round_up(x: int, m: int) -> int:
    return ((x + m - 1) // m) * m


def _round_down(x: int, m: int) -> int:
    return (x // m) * m


def _vmem_budget():
    """Generation-aware (per-output-block byte budget, vmem_limit_bytes)."""
    try:
        info = pltpu.get_tpu_info()
        cap = getattr(info, "vmem_capacity_bytes", None)
    except Exception:
        cap = None
    if cap is not None and cap >= 96 * 1024 * 1024:
        # v5e / v6e: 128 MiB physical VMEM -> bigger blocks + raised scoped limit.
        return 8 * 1024 * 1024, 64 * 1024 * 1024
    # v7x (64 MiB / TC) or unknown: stay inside the default 32 MiB scoped VMEM.
    return 6 * 1024 * 1024, 32 * 1024 * 1024


def make_onehot(n_classes: int,
                smooth=None,
                out_dtype=jnp.float32,
                tile_b: int | None = None,
                tile_c: int | None = None,
                min_pallas_bytes: int = 512 * 1024):
    """Returns a callable mimicking sslh.nn.labels.OneHot.forward."""
    out_dtype = jnp.dtype(out_dtype)
    itemsize = out_dtype.itemsize
    pack = _SUBLANE_PACK.get(itemsize, 8)
    block_budget, vmem_limit = _vmem_budget()

    # Class-axis tile for the standard path: full class dim if small, else
    # 2048-lane blocks (multiple of 128).
    if tile_c is None:
        tc = n_classes if n_classes <= 2048 else 2048
    else:
        tc = tile_c
    if tc != n_classes and tc % 128 != 0:
        tc = min(n_classes, _round_up(tc, 128))

    # Lane-dense path for small class counts: view the (N, C) output as
    # (N//k, k*C) with k*C = lcm(C, 128) so stores are full-lane.
    dense_k = None
    if n_classes < 128:
        k_cand = 128 // math.gcd(n_classes, 128)
        if k_cand * n_classes <= 4096:   # keep the expansion matrix small
            dense_k = k_cand

    # Fused on/off values:  one_hot*(1-s) + s/C  ==  where(eq, on, off).
    # NOTE: with an integer out_dtype + smoothing the values truncate, exactly
    # like the reference module's float math followed by .to(dtype).
    if smooth is not None:
        on_val = 1.0 - smooth + smooth / n_classes
        off_val = smooth / n_classes
    else:
        on_val, off_val = 1.0, 0.0
    on_cast = out_dtype.type(on_val)
    off_cast = out_dtype.type(off_val)

    # ---------------- kernels ----------------
    def std_kernel(t_ref, o_ref):
        # t_ref: (tb, 1) int32 labels; o_ref: (tb, tc) out_dtype.
        # Shift labels by the class-block origin (a (tb,1) op) instead of
        # offsetting the iota over the whole block; the iota stays
        # grid-invariant so Mosaic can hoist it.
        labels = t_ref[...] - pl.program_id(1) * tc
        classes = lax.broadcasted_iota(jnp.int32, o_ref.shape, 1)
        o_ref[...] = jnp.where(labels == classes, on_cast, off_cast).astype(o_ref.dtype)

    def dense_kernel(t_ref, o_ref):
        # t_ref: (tb, k) int32 labels; o_ref: (tb, k*C), k*C a multiple of 128.
        k = dense_k
        c = n_classes
        t = t_ref[...]
        seg = lax.broadcasted_iota(jnp.int32, t.shape, 1)
        valid = jnp.logical_and(t >= 0, t < c)
        # adj[r, s] = label + C*s  (or -1 for invalid labels -> all-off row).
        adj = jnp.where(valid, t + c * seg, -1).astype(jnp.float32)        # (tb, k)
        # Constant segment-expansion matrix E[s, j] = (s*C <= j < (s+1)*C);
        # the label expansion along lanes runs on the otherwise-idle MXU.
        row = lax.broadcasted_iota(jnp.int32, (k, k * c), 0)
        col = lax.broadcasted_iota(jnp.int32, (k, k * c), 1)
        e_mat = jnp.logical_and(col >= c * row, col < c * (row + 1)).astype(jnp.float32)
        adj_exp = jnp.dot(adj, e_mat, preferred_element_type=jnp.float32)  # (tb, k*C)
        j = lax.broadcasted_iota(jnp.int32, o_ref.shape, 1).astype(jnp.float32)
        o_ref[...] = jnp.where(adj_exp == j, on_cast, off_cast).astype(o_ref.dtype)

    # ---------------- wrapper helpers ----------------
    def _xla_fallback(target):
        oh = jax.nn.one_hot(target, n_classes, dtype=jnp.float32)
        if smooth is not None:
            oh = (1.0 - smooth) * oh + smooth / n_classes
        return oh.astype(out_dtype)

    def _row_tile(n_rows, row_width_elems, n_class_blocks):
        if tile_b is None:
            tb = block_budget // max(1, row_width_elems * itemsize)
            tb = min(8192, tb)
        else:
            tb = tile_b
        tb = min(tb, _round_up(n_rows, pack))
        tb = max(pack, _round_down(tb, pack))
        # v7x megacore: keep >= 2 blocks on the parallel row axis when the
        # class axis cannot provide parallel work.
        if n_class_blocks == 1 and n_rows >= 2 * pack:
            half = max(pack, _round_down((n_rows + 1) // 2, pack))
            tb = min(tb, half)
        return tb

    def _pallas_std(flat, n):
        n_cls_blocks = _cdiv(n_classes, tc)
        tb = _row_tile(n, tc, n_cls_blocks)
        grid = (_cdiv(n, tb), n_cls_blocks)
        return pl.pallas_call(
            std_kernel,
            out_shape=jax.ShapeDtypeStruct((n, n_classes), out_dtype),
            grid=grid,
            in_specs=[pl.BlockSpec((tb, 1), lambda i, j: (i, 0))],
            out_specs=pl.BlockSpec((tb, tc), lambda i, j: (i, j)),
            compiler_params=pltpu.CompilerParams(
                dimension_semantics=("parallel", "parallel"),
                vmem_limit_bytes=vmem_limit),
            cost_estimate=pl.CostEstimate(
                flops=2 * n * n_classes, transcendentals=0,
                bytes_accessed=n * n_classes * itemsize + n * 4),
        )(flat.reshape(n, 1))

    def _pallas_dense(flat, n):
        k = dense_k
        kc = k * n_classes
        n_view = n // k
        tb = _row_tile(n_view, kc, 1)
        grid = (_cdiv(n_view, tb),)
        out = pl.pallas_call(
            dense_kernel,
            out_shape=jax.ShapeDtypeStruct((n_view, kc), out_dtype),
            grid=grid,
            in_specs=[pl.BlockSpec((tb, k), lambda i: (i, 0))],
            out_specs=pl.BlockSpec((tb, kc), lambda i: (i, 0)),
            compiler_params=pltpu.CompilerParams(
                dimension_semantics=("parallel",),
                vmem_limit_bytes=vmem_limit),
            cost_estimate=pl.CostEstimate(
                flops=2 * n * n_classes * (k + 1), transcendentals=0,
                bytes_accessed=n * n_classes * itemsize + n * 4),
        )(flat.reshape(n_view, k))
        return out.reshape(n, n_classes)   # row-major view, no HBM re-touch

    def onehot(target):
        target = jnp.asarray(target, jnp.int32)
        orig_shape = target.shape
        n = int(target.size)

        # Tiny outputs: a pallas_call is pure launch/DMA overhead; let XLA fuse.
        if n == 0 or n * n_classes * itemsize < min_pallas_bytes:
            return _xla_fallback(target)

        flat = target.reshape(-1)
        if dense_k is not None and n % dense_k == 0:
            out = _pallas_dense(flat, n)
        else:
            # NOTE: for C < 128 with N not divisible by k the stores stay masked
            # (vst.msk); a wrapper-side pad/slice would re-touch the output.
            out = _pallas_std(flat, n)
        return out.reshape(*orig_shape, n_classes)

    return onehot


if __name__ == "__main__":
    key = jax.random.PRNGKey(0)
    k1, k2, k3, k4 = jax.random.split(key, 4)

    def ref_onehot(t, c, s, dt):
        oh = jax.nn.one_hot(t, c, dtype=jnp.float32)
        if s is not None:
            oh = (1.0 - s) * oh + s / c
        return oh.astype(dt)

    # Case 1: standard path, class axis tiled (tile_c=128 -> 2 class blocks,
    # exercises the per-block label shift), smoothing, f32.
    c1, s1 = 256, 0.1
    t1 = jax.random.randint(k1, (4, 128), 0, c1, dtype=jnp.int32)
    f1 = make_onehot(c1, smooth=s1, out_dtype=jnp.float32, tile_c=128,
                     min_pallas_bytes=0)
    o1 = jax.block_until_ready(f1(t1))
    r1 = ref_onehot(t1, c1, s1, jnp.float32)
    assert o1.shape == (4, 128, c1), o1.shape
    assert o1.dtype == jnp.float32, o1.dtype
    assert jnp.allclose(o1, r1, atol=1e-6), "case 1 mismatch vs reference"

    # Case 2: standard path, bf16 output (sublane pack 16), single class block;
    # exercises the >=2-row-block megacore clamp.
    c2 = 384
    t2 = jax.random.randint(k2, (8, 64), 0, c2, dtype=jnp.int32)
    f2 = make_onehot(c2, smooth=None, out_dtype=jnp.bfloat16, min_pallas_bytes=0)
    o2 = jax.block_until_ready(f2(t2))
    r2 = ref_onehot(t2, c2, None, jnp.bfloat16)
    assert o2.dtype == jnp.bfloat16, o2.dtype
    assert jnp.array_equal(o2, r2), "case 2 mismatch vs reference"

    # Case 3: lane-dense small-C path (C=10 -> k=64, 640-lane blocks, MXU
    # segment expansion), smoothing, f32.
    c3, s3 = 10, 0.1
    t3 = jax.random.randint(k3, (4, 256), 0, c3, dtype=jnp.int32)
    f3 = make_onehot(c3, smooth=s3, out_dtype=jnp.float32, min_pallas_bytes=0)
    o3 = jax.block_until_ready(f3(t3))
    r3 = ref_onehot(t3, c3, s3, jnp.float32)
    assert o3.shape == (4, 256, c3), o3.shape
    assert jnp.allclose(o3, r3, atol=1e-6), "case 3 mismatch vs reference"

    # Case 4: tiny input -> XLA fallback (default 512 KiB Pallas threshold).
    t4 = jax.random.randint(k4, (2, 8), 0, 10, dtype=jnp.int32)
    f4 = make_onehot(10, smooth=0.1, out_dtype=jnp.float32)
    o4 = jax.block_until_ready(f4(t4))
    r4 = ref_onehot(t4, 10, 0.1, jnp.float32)
    assert o4.shape == (2, 8, 10), o4.shape
    assert jnp.allclose(o4, r4, atol=1e-6), "case 4 mismatch vs reference"

    print("KERNEL_OK")
</pallas_src>

<mosaic_0001>
module attributes {stable_mosaic.version = 11 : i64} {
  func.func @std_kernel(%arg0: i32, %arg1: i32, %arg2: memref<512x1xi32, #tpu.memory_space<vmem>>, %arg3: memref<512x128xf32, #tpu.memory_space<vmem>>) attributes {dimension_semantics = [#tpu.dimension_semantics<parallel>, #tpu.dimension_semantics<parallel>], iteration_bounds = array<i64: 1, 2>, scalar_prefetch = 0 : i64, scratch_operands = 0 : i64, tpu.core_type = #tpu.core_type<tc>, window_params = [{transform_indices = @transform_0, window_bounds = array<i64: 512, 1>}, {transform_indices = @transform_1, window_bounds = array<i64: 512, 128>}]} {
    %c0 = arith.constant 0 : index
    %c0_0 = arith.constant 0 : index
    %0 = vector.load %arg2[%c0, %c0_0] : memref<512x1xi32, #tpu.memory_space<vmem>>, vector<512x1xi32>
    %c128_i32 = arith.constant 128 : i32
    %1 = arith.muli %arg1, %c128_i32 : i32
    %2 = vector.broadcast %1 : i32 to vector<512x1xi32>
    %3 = arith.subi %0, %2 : vector<512x1xi32>
    %4 = tpu.iota {dimensions = array<i32: 1>} : vector<512x128xi32>
    %5 = vector.broadcast %3 : vector<512x1xi32> to vector<512x128xi32>
    %6 = arith.cmpi eq, %5, %4 : vector<512x128xi32>
    %cst = arith.constant 0.900390625 : f32
    %cst_1 = arith.constant 3.906250e-04 : f32
    %7 = vector.broadcast %cst : f32 to vector<512x128xf32>
    %8 = vector.broadcast %cst_1 : f32 to vector<512x128xf32>
    %9 = arith.select %6, %7, %8 : vector<512x128xi1>, vector<512x128xf32>
    %c0_2 = arith.constant 0 : index
    %c0_3 = arith.constant 0 : index
    %10 = vector.load %arg3[%c0_2, %c0_3] : memref<512x128xf32, #tpu.memory_space<vmem>>, vector<512x128xf32>
    tpu.vector_store %arg3[%c0_2, %c0_3], %9 {strides = array<i32>} : memref<512x128xf32, #tpu.memory_space<vmem>>, vector<512x128xf32>,
    return
  }
  func.func @transform_0(%arg0: i32, %arg1: i32) -> (i32, i32) {
    %c0_i32 = arith.constant 0 : i32
    %c0_i32_0 = arith.constant 0 : i32
    return %arg0, %c0_i32 : i32, i32
  }
  func.func @transform_1(%arg0: i32, %arg1: i32) -> (i32, i32) {
    %c0_i32 = arith.constant 0 : i32
    return %arg0, %arg1 : i32, i32
  }
}

</mosaic_0001>

<bundles_post_ra>
// kernel: tpu_custom_call.1
= control target key start
LH: loop header
LB: loop body
LE: loop exit
PB: predicated region body
PF: predicated region fallthrough
CT: control target
= control target key end

     0   :  { %6 = vsyncpa [#allocation3], 0  ;;  %s1462_s0 = inlined_call_operand.vmem [shape: s32[512,1], index: 0, kind: input, shape index: {}]   ;;  %s1463_s1 = inlined_call_operand.hbm [shape: f32[512,256], index: 1, kind: output, shape index: {}]  }
   0x1   :  { %8 = vsyncpa [#allocation3 + $0x1], 0  ;;  %s910_s6 = smov 0   ;;  %s912_s7 = smov 0  }
   0x2   :  { %s914_s8 = smov 0   ;;  %s916_s9 = smov 0  }
   0x3   :  { %s918_s10 = smov 0   ;;  %s920_s11 = smov 0  }
   0x4 LB: > { %s741_s12 = sadd.s32 4294967295, %s893_s11   ;;  %s742_s13 = sadd.s32 4294967294, %s893_s11   ;;  %s893_s11 = sphi %s920_s11, %s14_s11   ;;  %s889_s10 = sphi %s918_s10, %s1470_s10   ;;  %s885_s9 = sphi %s916_s9, %s1469_s9   ;;  %s881_s8 = sphi %s914_s8, %s1468_s8   ;;  %s877_s7 = sphi %s912_s7, %s1467_s7   ;;  %s873_s6 = sphi %s910_s6, %s1466_s6  }
   0x5   : > { %s23_s14 = sadd.s32 1, %s889_s10  ;;  %s61_s15 = sadd.s32 1, %s881_s8 }
   0x6   : > { %p24_p0 = scmp.ge.s32.totalorder %s23_s14, 2  ;;  %p71_p1 = scmp.ne.s32.totalorder %s881_s8, %s877_s7 }
   0x7   : > { %p72_p2 = scmp.eq.s32.totalorder %s741_s12, 1  ;;  %p77_p3 = scmp.ne.s32.totalorder %s877_s7, %s873_s6 }
   0x8   : > { %s1472_s14 = smov (%p24_p0, %s23_s14), 0  ;;  %p78_p5 = scmp.eq.s32.totalorder %s742_s13, 1 }
   0x9   : > { %p950_p4 = por %p72_p2, %p71_p1  ;;  %s57_s17 = ssub.s32 %s889_s10, %s1472_s14 }
   0xa   : > { %p745_p6 = scmp.ge.s32.totalorder %s893_s11, 1  ;;  %p59_p7 = scmp.eq.s32.totalorder %s57_s17, 0 }
   0xb   : > { %p957_p8 = por %p78_p5, %p77_p3  ;;  %p105_p9 = scmp.lt.s32.totalorder %s893_s11, 3 }
   0xc   : > { %s963_s19 = scalar_select %p59_p7, %s881_s8, %s61_s15  }
   0xd   : > { %p106_p10 = pnand %p745_p6, %p105_p9 }
   0xe   : > { %s747_s22 = sshll.u32 (!%p106_p10), %s885_s9, 7  ;;  %s122_s13 = sand.u32 (!%p106_p10), 1, %s877_s7  }
   0xf   : > { %109 = sbr.rel (%p106_p10) target bundleno = 314 (0x13a), region = 24  ;;  %s746_s15 = sshll.u32 (!%p106_p10), %s122_s13, 9 }
  0x10   : > { %s1130_s25 = scalar_lea.vmem (!%p106_p10), [#allocation2], %s746_s15  ;;  %s749_s24 = sshll.u32 (!%p106_p10), %s885_s9, 3 }
  0x11   : > { %s662_s28 = scalar_lea.hbm (!%p106_p10), %s1463_s1, %s749_s24  ;;  %s663_s29 = sshll.u32 (!%p106_p10), %s1130_s25, 4  ;;  %s664_s29 = int_to_ptr.vmem [resolvable:$true] %s663_s29 }
  0x12   : > { %s665_s9 = sshll.u32 (!%p106_p10), %s662_s28, 4  ;;  %s649_s30 = scalar_lea.sflag (!%p106_p10), [#allocation3], %s122_s13  ;;  %s666_s9 = int_to_ptr.hbm [resolvable:$true] %s665_s9 }
  0x13   : > { %s829_s2 = sshra.s32 (!%p106_p10), %s666_s9, 4  ;;  %s835_s12 = scalar_lea.hbm (!%p106_p10), %s1463_s1, 1024  ;;  %s830_s2 = int_to_ptr.hbm [resolvable:$true] %s829_s2 }
  0x14   : > { %v136_v0 = vld [vmem:[%s1462_s0 + $0x20] sm:$0xff]  ;;  %v134_v1 = vld [vmem:[%s1462_s0 + $0x10] sm:$0xff]  ;;  %v895_v3 = vmov 0   ;;  %v975_v4 = vstv %s747_s22  ;;  %v137_v8 = vld [vmem:[%s1462_s0 + $0x28] sm:$0xff]  ;;  %s831_s3 = scalar_lea.hbm %s830_s2, 512  ;;  %p836_p0 = scmp.lt.s32.totalorder %s830_s2, %s1463_s1 }
  0x15   : > { %v132_v2 = vld [vmem:[%s1462_s0] sm:$0xff]  ;;  %814 = vset.pattern.permute.xlu2 %v895_v3  ;;  %813 = vset.pattern.permute.xlu1 %v895_v3  ;;  %v202_v5 = vsub.s32 %v136_v0, %v975_v4  ;;  %v200_v6 = vsub.s32 %v134_v1, %v975_v4  ;;  %v135_v9 = vld [vmem:[%s1462_s0 + $0x18] sm:$0xff]  ;;  %v133_v10 = vld [vmem:[%s1462_s0 + $0x8] sm:$0xff]  ;;  %v203_v11 = vsub.s32 %v137_v8, %v975_v4  ;;  %p832_p11 = scmp.ne.s32.totalorder %s830_s2, %s831_s3  ;;  %p837_p1 = scmp.lt.s32.totalorder %s835_s12, %s831_s3 }
  0x16   : > { %812 = vset.pattern.permute.xlu0 %v895_v3  ;;  %v198_v7 = vsub.s32 %v132_v2, %v975_v4  ;;  %v201_v12 = vsub.s32 %v135_v9, %v975_v4  ;;  %v199_v13 = vsub.s32 %v133_v10, %v975_v4  ;;  %v140_v14 = vld [vmem:[%s1462_s0 + $0x40] sm:$0xff]  ;;  %v139_v15 = vld [vmem:[%s1462_s0 + $0x38] sm:$0xff]  ;;  %v138_v16 = vld [vmem:[%s1462_s0 + $0x30] sm:$0xff] }
  0x17   : > { %277 = vperm.xlu2 %814, %v202_v5   ;;  %271 = vperm.xlu1 %813, %v200_v6   ;;  %v206_v17 = vsub.s32 %v140_v14, %v975_v4  ;;  %v205_v18 = vsub.s32 %v139_v15, %v975_v4  ;;  %v204_v19 = vsub.s32 %v138_v16, %v975_v4  ;;  %v143_v20 = vld [vmem:[%s1462_s0 + $0x58] sm:$0xff]  ;;  %v142_v21 = vld [vmem:[%s1462_s0 + $0x50] sm:$0xff]  ;;  %v141_v22 = vld [vmem:[%s1462_s0 + $0x48] sm:$0xff]  ;;  %p833_p12 = pnand %p832_p11, %p950_p4  ;;  %p838_p2 = por %p837_p1, %p836_p0 }
  0x18   : > { %265 = vperm.xlu0 %812, %v198_v7   ;;  %v209_v23 = vsub.s32 %v143_v20, %v975_v4  ;;  %v208_v24 = vsub.s32 %v142_v21, %v975_v4  ;;  %v207_v25 = vsub.s32 %v141_v22, %v975_v4  ;;  %v146_v26 = vld [vmem:[%s1462_s0 + $0x70] sm:$0xff]  ;;  %v145_v27 = vld [vmem:[%s1462_s0 + $0x68] sm:$0xff]  ;;  %v144_v28 = vld [vmem:[%s1462_s0 + $0x60] sm:$0xff] }
  0x19   : > { %v212_v29 = vsub.s32 %v146_v26, %v975_v4  ;;  %v211_v30 = vsub.s32 %v145_v27, %v975_v4  ;;  %v210_v31 = vsub.s32 %v144_v28, %v975_v4  ;;  %v149_v32 = vld [vmem:[%s1462_s0 + $0x88] sm:$0xff]  ;;  %v148_v33 = vld [vmem:[%s1462_s0 + $0x80] sm:$0xff]  ;;  %v147_v34 = vld [vmem:[%s1462_s0 + $0x78] sm:$0xff]  ;;  %p834_p13 = pneg %p833_p12 }
  0x1a   : > { %v215_v35 = vsub.s32 %v149_v32, %v975_v4  ;;  %v214_v36 = vsub.s32 %v148_v33, %v975_v4  ;;  %v213_v37 = vsub.s32 %v147_v34, %v975_v4  ;;  %v152_v38 = vld [vmem:[%s1462_s0 + $0xa0] sm:$0xff]  ;;  %v151_v39 = vld [vmem:[%s1462_s0 + $0x98] sm:$0xff]  ;;  %v150_v40 = vld [vmem:[%s1462_s0 + $0x90] sm:$0xff] }
  0x1b   : > { %v218_v41 = vsub.s32 %v152_v38, %v975_v4  ;;  %v217_v42 = vsub.s32 %v151_v39, %v975_v4  ;;  %v216_v43 = vsub.s32 %v150_v40, %v975_v4  ;;  %v155_v44 = vld [vmem:[%s1462_s0 + $0xb8] sm:$0xff]  ;;  %v154_v45 = vld [vmem:[%s1462_s0 + $0xb0] sm:$0xff]  ;;  %v153_v46 = vld [vmem:[%s1462_s0 + $0xa8] sm:$0xff]  ;;  %p839_p3 = pnand %p838_p2, %p834_p13 }
  0x1c   : > { %v221_v47 = vsub.s32 %v155_v44, %v975_v4  ;;  %v220_v48 = vsub.s32 %v154_v45, %v975_v4  ;;  %v219_v49 = vsub.s32 %v153_v46, %v975_v4  ;;  %v158_v50 = vld [vmem:[%s1462_s0 + $0xd0] sm:$0xff]  ;;  %v157_v51 = vld [vmem:[%s1462_s0 + $0xc8] sm:$0xff]  ;;  %v156_v52 = vld [vmem:[%s1462_s0 + $0xc0] sm:$0xff] }
  0x1d   : > { %v224_v53 = vsub.s32 %v158_v50, %v975_v4  ;;  %v223_v54 = vsub.s32 %v157_v51, %v975_v4  ;;  %v222_v55 = vsub.s32 %v156_v52, %v975_v4  ;;  %v161_v56 = vld [vmem:[%s1462_s0 + $0xe8] sm:$0xff]  ;;  %v160_v57 = vld [vmem:[%s1462_s0 + $0xe0] sm:$0xff]  ;;  %v159_v58 = vld [vmem:[%s1462_s0 + $0xd8] sm:$0xff] }
  0x1e   : > { %v227_v59 = vsub.s32 %v161_v56, %v975_v4  ;;  %v226_v60 = vsub.s32 %v160_v57, %v975_v4  ;;  %v225_v61 = vsub.s32 %v159_v58, %v975_v4  ;;  %v164_v62 = vld [vmem:[%s1462_s0 + $0x100] sm:$0xff]  ;;  %v163_v63 = vld [vmem:[%s1462_s0 + $0xf8] sm:$0xff]  ;;  %v162_v0 = vld [vmem:[%s1462_s0 + $0xf0] sm:$0xff] }
  0x1f   : > { %280 = vperm.xlu2 %814, %v203_v11   ;;  %274 = vperm.xlu1 %813, %v201_v12   ;;  %v230_v1 = vsub.s32 %v164_v62, %v975_v4  ;;  %v229_v2 = vsub.s32 %v163_v63, %v975_v4  ;;  %v228_v3 = vsub.s32 %v162_v0, %v975_v4  ;;  %v167_v5 = vld [vmem:[%s1462_s0 + $0x118] sm:$0xff]  ;;  %v166_v6 = vld [vmem:[%s1462_s0 + $0x110] sm:$0xff]  ;;  %v165_v7 = vld [vmem:[%s1462_s0 + $0x108] sm:$0xff]  ;;  %v262_v11 = vlaneseq }
  0x20   : > { %268 = vperm.xlu0 %812, %v199_v13   ;;  %v233_v8 = vsub.s32 %v167_v5, %v975_v4  ;;  %v232_v9 = vsub.s32 %v166_v6, %v975_v4  ;;  %v231_v10 = vsub.s32 %v165_v7, %v975_v4  ;;  %v170_v13 = vld [vmem:[%s1462_s0 + $0x130] sm:$0xff]  ;;  %v169_v14 = vld [vmem:[%s1462_s0 + $0x128] sm:$0xff]  ;;  %v168_v16 = vld [vmem:[%s1462_s0 + $0x120] sm:$0xff] }
  0x21   : > { %v1113_v12 = vand.u32 127, %v262_v11  ;;  %v235_v20 = vsub.s32 %v169_v14, %v975_v4  ;;  %v234_v21 = vsub.s32 %v168_v16, %v975_v4  ;;  %v173_v22 = vld [vmem:[%s1462_s0 + $0x148] sm:$0xff]  ;;  %v174_v33 = vld [vmem:[%s1462_s0 + $0x150] sm:$0xff]  ;;  %v179_v38 = vld [vmem:[%s1462_s0 + $0x178] sm:$0xff] }
  0x22   : > { %v239_v27 = vsub.s32 %v173_v22, %v975_v4  ;;  %v178_v39 = vld [vmem:[%s1462_s0 + $0x170] sm:$0xff]  ;;  %v245_v44 = vsub.s32 %v179_v38, %v975_v4  ;;  %v181_v51 = vld [vmem:[%s1462_s0 + $0x188] sm:$0xff]  ;;  %v184_v63 = vld [vmem:[%s1462_s0 + $0x1a0] sm:$0xff] }
  0x23   : > { %v182_v50 = vld [vmem:[%s1462_s0 + $0x190] sm:$0xff]  ;;  %v185_v62 = vld [vmem:[%s1462_s0 + $0x1a8] sm:$0xff]  ;;  %v188_v11 = vld [vmem:[%s1462_s0 + $0x1c0] sm:$0xff] }
  0x24   : > { %v248_v56 = vsub.s32 %v182_v50, %v975_v4  ;;  %v251_v5 = vsub.s32 %v185_v62, %v975_v4  ;;  %v186_v16 = vld [vmem:[%s1462_s0 + $0x1b0] sm:$0xff]  ;;  %v193_v38 = vld [vmem:[%s1462_s0 + $0x1e8] sm:$0xff] }
  0x27   : > { %289 = vperm.xlu2 %814, %v206_v17   ;;  %286 = vperm.xlu1 %813, %v205_v18   ;;  %v896_v17 = vmov 0.000390625  }
  0x28   : > { %283 = vperm.xlu0 %812, %v204_v19   ;;  %v236_v19 = vsub.s32 %v170_v13, %v975_v4  ;;  %v187_v13 = vld [vmem:[%s1462_s0 + $0x1b8] sm:$0xff] }
  0x29   : > { %v253_v22 = vsub.s32 %v187_v13, %v975_v4 }
  0x2f   : > { %298 = vperm.xlu2 %814, %v209_v23   ;;  %295 = vperm.xlu1 %813, %v208_v24   ;;  %v172_v23 = vld [vmem:[%s1462_s0 + $0x140] sm:$0xff] }
  0x30   : > { %292 = vperm.xlu0 %812, %v207_v25   ;;  %v171_v25 = vld [vmem:[%s1462_s0 + $0x138] sm:$0xff]  ;;  %v238_v28 = vsub.s32 %v172_v23, %v975_v4 }
  0x37   : > { %307 = vperm.xlu2 %814, %v212_v29   ;;  %304 = vperm.xlu1 %813, %v211_v30   ;;  %v237_v29 = vsub.s32 %v171_v25, %v975_v4  ;;  %v176_v30 = vld [vmem:[%s1462_s0 + $0x160] sm:$0xff]  ;;  %v191_v25 = vld [vmem:[%s1462_s0 + $0x1d8] sm:$0xff] }
  0x38   : > { %301 = vperm.xlu0 %812, %v210_v31   ;;  %v175_v31 = vld [vmem:[%s1462_s0 + $0x158] sm:$0xff] }
  0x3f   : > { %316 = vperm.xlu2 %814, %v215_v35   ;;  %313 = vperm.xlu1 %813, %v214_v36   ;;  %v242_v35 = vsub.s32 %v176_v30, %v975_v4  ;;  %v241_v36 = vsub.s32 %v175_v31, %v975_v4  ;;  %v257_v31 = vsub.s32 %v191_v25, %v975_v4 }
  0x40   : > { %310 = vperm.xlu0 %812, %v213_v37   ;;  %v240_v37 = vsub.s32 %v174_v33, %v975_v4 }
  0x47   : > { %325 = vperm.xlu2 %814, %v218_v41   ;;  %322 = vperm.xlu1 %813, %v217_v42   ;;  %v177_v42 = vld [vmem:[%s1462_s0 + $0x168] sm:$0xff] }
  0x48   : > { %319 = vperm.xlu0 %812, %v216_v43  }
  0x4f   : > { %334 = vperm.xlu2 %814, %v221_v47   ;;  %331 = vperm.xlu1 %813, %v220_v48   ;;  %v244_v47 = vsub.s32 %v178_v39, %v975_v4 }
  0x50   : > { %328 = vperm.xlu0 %812, %v219_v49   ;;  %v243_v49 = vsub.s32 %v177_v42, %v975_v4 }
  0x57   : > { %343 = vperm.xlu2 %814, %v224_v53   ;;  %340 = vperm.xlu1 %813, %v223_v54   ;;  %v180_v54 = vld [vmem:[%s1462_s0 + $0x180] sm:$0xff] }
  0x58   : > { %337 = vperm.xlu0 %812, %v222_v55  }
  0x5f   : > { %352 = vperm.xlu2 %814, %v227_v59   ;;  %349 = vperm.xlu1 %813, %v226_v60   ;;  %v247_v59 = vsub.s32 %v181_v51, %v975_v4  ;;  %v195_v51 = vld [vmem:[%s1462_s0 + $0x1f8] sm:$0xff] }
  0x60   : > { %346 = vperm.xlu0 %812, %v225_v61   ;;  %v246_v61 = vsub.s32 %v180_v54, %v975_v4 }
  0x67   : > { %361 = vperm.xlu2 %814, %v230_v1   ;;  %358 = vperm.xlu1 %813, %v229_v2   ;;  %v183_v2 = vld [vmem:[%s1462_s0 + $0x198] sm:$0xff] }
  0x68   : > { %355 = vperm.xlu0 %812, %v228_v3  }
  0x6f   : > { %370 = vperm.xlu2 %814, %v233_v8   ;;  %367 = vperm.xlu1 %813, %v232_v9   ;;  %v250_v8 = vsub.s32 %v184_v63, %v975_v4 }
  0x70   : > { %364 = vperm.xlu0 %812, %v231_v10   ;;  %v249_v10 = vsub.s32 %v183_v2, %v975_v4 }
  0x71   : > { %v278_v15 = vpop.permute.xlu2 %277 }
  0x72   : > { %vm460_vm0 = vcmp.eq.s32.totalorder %v278_v15, %v1113_v12 }
  0x73   : > { %v524_v18 = vsel %vm460_vm0, 0.9003906, %v896_v17 }
  0x74   : > { %588 = vst [vmem:[%s1130_s25 + $0x20] sm:$0xff] %v524_v18 }
  0x77   : > { %379 = vperm.xlu2 %814, %v236_v19   ;;  %376 = vperm.xlu1 %813, %v235_v20   ;;  %v254_v19 = vsub.s32 %v188_v11, %v975_v4 }
  0x78   : > { %373 = vperm.xlu0 %812, %v234_v21  }
  0x79   : > { %v281_v24 = vpop.permute.xlu2 %280 }
  0x7a   : > { %vm461_vm1 = vcmp.eq.s32.totalorder %v281_v24, %v1113_v12  ;;  %v252_v24 = vsub.s32 %v186_v16, %v975_v4 }
  0x7b   : > { %v525_v26 = vsel %vm461_vm1, 0.9003906, %v896_v17 }
  0x7c   : > { %589 = vst [vmem:[%s1130_s25 + $0x28] sm:$0xff] %v525_v26  ;;  %v190_v26 = vld [vmem:[%s1462_s0 + $0x1d0] sm:$0xff] }
  0x7f   : > { %388 = vperm.xlu2 %814, %v239_v27   ;;  %385 = vperm.xlu1 %813, %v238_v28  }
  0x80   : > { %382 = vperm.xlu0 %812, %v237_v29   ;;  %v189_v29 = vld [vmem:[%s1462_s0 + $0x1c8] sm:$0xff] }
  0x81   : > { %v290_v32 = vpop.permute.xlu2 %289 }
  0x82   : > { %vm464_vm2 = vcmp.eq.s32.totalorder %v290_v32, %v1113_v12 }
  0x83   : > { %v528_v34 = vsel %vm464_vm2, 0.9003906, %v896_v17 }
  0x84   : > { %592 = vst [vmem:[%s1130_s25 + $0x40] sm:$0xff] %v528_v34  ;;  %v256_v34 = vsub.s32 %v190_v26, %v975_v4 }
  0x87   : > { %397 = vperm.xlu2 %814, %v242_v35   ;;  %394 = vperm.xlu1 %813, %v241_v36   ;;  %v255_v36 = vsub.s32 %v189_v29, %v975_v4 }
  0x88   : > { %391 = vperm.xlu0 %812, %v240_v37   ;;  %v194_v37 = vld [vmem:[%s1462_s0 + $0x1f0] sm:$0xff] }
  0x89   : > { %v299_v40 = vpop.permute.xlu2 %298  ;;  %v272_v41 = vpop.permute.xlu1 %271 }
  0x8a   : > { %vm467_vm3 = vcmp.eq.s32.totalorder %v299_v40, %v1113_v12  ;;  %vm458_vm4 = vcmp.eq.s32.totalorder %v272_v41, %v1113_v12  ;;  %v266_v43 = vpop.permute.xlu0 %265  ;;  %v192_v41 = vld [vmem:[%s1462_s0 + $0x1e0] sm:$0xff] }
  0x8b   : > { %v531_v45 = vsel %vm467_vm3, 0.9003906, %v896_v17  ;;  %v522_v46 = vsel %vm458_vm4, 0.9003906, %v896_v17  ;;  %vm456_vm5 = vcmp.eq.s32.totalorder %v266_v43, %v1113_v12  ;;  %v260_v43 = vsub.s32 %v194_v37, %v975_v4 }
  0x8c   : > { %595 = vst [vmem:[%s1130_s25 + $0x58] sm:$0xff] %v531_v45  ;;  %v520_v48 = vsel %vm456_vm5, 0.9003906, %v896_v17 }
  0x8d   : > { %586 = vst [vmem:[%s1130_s25 + $0x10] sm:$0xff] %v522_v46  ;;  %v259_v46 = vsub.s32 %v193_v38, %v975_v4 }
  0x8e   : > { %584 = vst [vmem:[%s1130_s25] sm:$0xff] %v520_v48  ;;  %v258_v48 = vsub.s32 %v192_v41, %v975_v4 }
  0x8f   : > { %406 = vperm.xlu2 %814, %v245_v44   ;;  %403 = vperm.xlu1 %813, %v244_v47  }
  0x90   : > { %400 = vperm.xlu0 %812, %v243_v49  }
  0x91   : > { %v308_v52 = vpop.permute.xlu2 %307  ;;  %v275_v53 = vpop.permute.xlu1 %274 }
  0x92   : > { %vm470_vm6 = vcmp.eq.s32.totalorder %v308_v52, %v1113_v12  ;;  %vm459_vm7 = vcmp.eq.s32.totalorder %v275_v53, %v1113_v12  ;;  %v269_v55 = vpop.permute.xlu0 %268 }
  0x93   : > { %v534_v57 = vsel %vm470_vm6, 0.9003906, %v896_v17  ;;  %v523_v58 = vsel %vm459_vm7, 0.9003906, %v896_v17  ;;  %vm457_vm8 = vcmp.eq.s32.totalorder %v269_v55, %v1113_v12 }
  0x94   : > { %598 = vst [vmem:[%s1130_s25 + $0x70] sm:$0xff] %v534_v57  ;;  %v521_v60 = vsel %vm457_vm8, 0.9003906, %v896_v17 }
  0x95   : > { %587 = vst [vmem:[%s1130_s25 + $0x18] sm:$0xff] %v523_v58 }
  0x96   : > { %585 = vst [vmem:[%s1130_s25 + $0x8] sm:$0xff] %v521_v60 }
  0x97   : > { %415 = vperm.xlu2 %814, %v248_v56   ;;  %412 = vperm.xlu1 %813, %v247_v59   ;;  %v261_v56 = vsub.s32 %v195_v51, %v975_v4 }
  0x98   : > { %409 = vperm.xlu0 %812, %v246_v61  }
  0x99   : > { %v317_v0 = vpop.permute.xlu2 %316  ;;  %v287_v1 = vpop.permute.xlu1 %286 }
  0x9a   : > { %vm473_vm9 = vcmp.eq.s32.totalorder %v317_v0, %v1113_v12  ;;  %vm463_vm10 = vcmp.eq.s32.totalorder %v287_v1, %v1113_v12  ;;  %v284_v3 = vpop.permute.xlu0 %283 }
  0x9b   : > { %v537_v6 = vsel %vm473_vm9, 0.9003906, %v896_v17  ;;  %v527_v7 = vsel %vm463_vm10, 0.9003906, %v896_v17  ;;  %vm462_vm11 = vcmp.eq.s32.totalorder %v284_v3, %v1113_v12 }
  0x9c   : > { %601 = vst [vmem:[%s1130_s25 + $0x88] sm:$0xff] %v537_v6  ;;  %v526_v9 = vsel %vm462_vm11, 0.9003906, %v896_v17 }
  0x9d   : > { %591 = vst [vmem:[%s1130_s25 + $0x38] sm:$0xff] %v527_v7 }
  0x9e   : > { %590 = vst [vmem:[%s1130_s25 + $0x30] sm:$0xff] %v526_v9 }
  0x9f   : > { %424 = vperm.xlu2 %814, %v251_v5   ;;  %421 = vperm.xlu1 %813, %v250_v8  }
  0xa0   : > { %418 = vperm.xlu0 %812, %v249_v10  }
  0xa1   : > { %v326_v14 = vpop.permute.xlu2 %325  ;;  %v296_v15 = vpop.permute.xlu1 %295 }
  0xa2   : > { %vm476_vm12 = vcmp.eq.s32.totalorder %v326_v14, %v1113_v12  ;;  %vm466_vm13 = vcmp.eq.s32.totalorder %v296_v15, %v1113_v12  ;;  %v293_v18 = vpop.permute.xlu0 %292 }
  0xa3   : > { %v540_v20 = vsel %vm476_vm12, 0.9003906, %v896_v17  ;;  %v530_v21 = vsel %vm466_vm13, 0.9003906, %v896_v17  ;;  %vm465_vm14 = vcmp.eq.s32.totalorder %v293_v18, %v1113_v12 }
  0xa4   : > { %604 = vst [vmem:[%s1130_s25 + $0xa0] sm:$0xff] %v540_v20  ;;  %v529_v23 = vsel %vm465_vm14, 0.9003906, %v896_v17 }
  0xa5   : > { %594 = vst [vmem:[%s1130_s25 + $0x50] sm:$0xff] %v530_v21 }
  0xa6   : > { %593 = vst [vmem:[%s1130_s25 + $0x48] sm:$0xff] %v529_v23 }
  0xa7   : > { %433 = vperm.xlu2 %814, %v254_v19   ;;  %430 = vperm.xlu1 %813, %v253_v22  }
  0xa8   : > { %427 = vperm.xlu0 %812, %v252_v24  }
  0xa9   : > { %v335_v27 = vpop.permute.xlu2 %334  ;;  %v305_v28 = vpop.permute.xlu1 %304 }
  0xaa   : > { %vm479_vm15 = vcmp.eq.s32.totalorder %v335_v27, %v1113_v12  ;;  %vm469_vm0 = vcmp.eq.s32.totalorder %v305_v28, %v1113_v12  ;;  %v302_v30 = vpop.permute.xlu0 %301 }
  0xab   : > { %v543_v32 = vsel %vm479_vm15, 0.9003906, %v896_v17  ;;  %v533_v33 = vsel %vm469_vm0, 0.9003906, %v896_v17  ;;  %vm468_vm1 = vcmp.eq.s32.totalorder %v302_v30, %v1113_v12 }
  0xac   : > { %607 = vst [vmem:[%s1130_s25 + $0xb8] sm:$0xff] %v543_v32  ;;  %v532_v35 = vsel %vm468_vm1, 0.9003906, %v896_v17 }
  0xad   : > { %597 = vst [vmem:[%s1130_s25 + $0x68] sm:$0xff] %v533_v33 }
  0xae   : > { %596 = vst [vmem:[%s1130_s25 + $0x60] sm:$0xff] %v532_v35 }
  0xaf   : > { %442 = vperm.xlu2 %814, %v257_v31   ;;  %439 = vperm.xlu1 %813, %v256_v34  }
  0xb0   : > { %436 = vperm.xlu0 %812, %v255_v36  }
  0xb1   : > { %v344_v39 = vpop.permute.xlu2 %343  ;;  %v314_v40 = vpop.permute.xlu1 %313 }
  0xb2   : > { %vm482_vm2 = vcmp.eq.s32.totalorder %v344_v39, %v1113_v12  ;;  %vm472_vm3 = vcmp.eq.s32.totalorder %v314_v40, %v1113_v12  ;;  %v311_v42 = vpop.permute.xlu0 %310 }
  0xb3   : > { %v546_v44 = vsel %vm482_vm2, 0.9003906, %v896_v17  ;;  %v536_v45 = vsel %vm472_vm3, 0.9003906, %v896_v17  ;;  %vm471_vm4 = vcmp.eq.s32.totalorder %v311_v42, %v1113_v12 }
  0xb4   : > { %610 = vst [vmem:[%s1130_s25 + $0xd0] sm:$0xff] %v546_v44  ;;  %v535_v47 = vsel %vm471_vm4, 0.9003906, %v896_v17 }
  0xb5   : > { %600 = vst [vmem:[%s1130_s25 + $0x80] sm:$0xff] %v536_v45 }
  0xb6   : > { %599 = vst [vmem:[%s1130_s25 + $0x78] sm:$0xff] %v535_v47 }
  0xb7   : > { %451 = vperm.xlu2 %814, %v260_v43   ;;  %448 = vperm.xlu1 %813, %v259_v46  }
  0xb8   : > { %445 = vperm.xlu0 %812, %v258_v48  }
  0xb9   : > { %v353_v49 = vpop.permute.xlu2 %352  ;;  %v323_v50 = vpop.permute.xlu1 %322 }
  0xba   : > { %vm485_vm5 = vcmp.eq.s32.totalorder %v353_v49, %v1113_v12  ;;  %vm475_vm6 = vcmp.eq.s32.totalorder %v323_v50, %v1113_v12  ;;  %v320_v52 = vpop.permute.xlu0 %319 }
  0xbb   : > { %v549_v53 = vsel %vm485_vm5, 0.9003906, %v896_v17  ;;  %v539_v54 = vsel %vm475_vm6, 0.9003906, %v896_v17  ;;  %vm474_vm7 = vcmp.eq.s32.totalorder %v320_v52, %v1113_v12 }
  0xbc   : > { %613 = vst [vmem:[%s1130_s25 + $0xe8] sm:$0xff] %v549_v53  ;;  %v538_v55 = vsel %vm474_vm7, 0.9003906, %v896_v17 }
  0xbd   : > { %603 = vst [vmem:[%s1130_s25 + $0x98] sm:$0xff] %v539_v54 }
  0xbe   : > { %602 = vst [vmem:[%s1130_s25 + $0x90] sm:$0xff] %v538_v55 }
  0xc0   : > { %454 = vperm.xlu0 %812, %v261_v56  }
  0xc1   : > { %v362_v57 = vpop.permute.xlu2 %361  ;;  %v332_v58 = vpop.permute.xlu1 %331 }
  0xc2   : > { %vm488_vm8 = vcmp.eq.s32.totalorder %v362_v57, %v1113_v12  ;;  %vm478_vm9 = vcmp.eq.s32.totalorder %v332_v58, %v1113_v12  ;;  %v329_v59 = vpop.permute.xlu0 %328 }
  0xc3   : > { %v552_v60 = vsel %vm488_vm8, 0.9003906, %v896_v17  ;;  %v542_v61 = vsel %vm478_vm9, 0.9003906, %v896_v17  ;;  %vm477_vm10 = vcmp.eq.s32.totalorder %v329_v59, %v1113_v12 }
  0xc4   : > { %616 = vst [vmem:[%s1130_s25 + $0x100] sm:$0xff] %v552_v60  ;;  %v541_v4 = vsel %vm477_vm10, 0.9003906, %v896_v17 }
  0xc5   : > { %606 = vst [vmem:[%s1130_s25 + $0xb0] sm:$0xff] %v542_v61 }
  0xc6   : > { %605 = vst [vmem:[%s1130_s25 + $0xa8] sm:$0xff] %v541_v4 }
  0xc9   : > { %v371_v62 = vpop.permute.xlu2 %370  ;;  %v341_v63 = vpop.permute.xlu1 %340 }
  0xca   : > { %vm491_vm11 = vcmp.eq.s32.totalorder %v371_v62, %v1113_v12  ;;  %vm481_vm12 = vcmp.eq.s32.totalorder %v341_v63, %v1113_v12  ;;  %v338_v0 = vpop.permute.xlu0 %337 }
  0xcb   : > { %v555_v1 = vsel %vm491_vm11, 0.9003906, %v896_v17  ;;  %v545_v2 = vsel %vm481_vm12, 0.9003906, %v896_v17  ;;  %vm480_vm13 = vcmp.eq.s32.totalorder %v338_v0, %v1113_v12 }
  0xcc   : > { %619 = vst [vmem:[%s1130_s25 + $0x118] sm:$0xff] %v555_v1  ;;  %v544_v3 = vsel %vm480_vm13, 0.9003906, %v896_v17 }
  0xcd   : > { %609 = vst [vmem:[%s1130_s25 + $0xc8] sm:$0xff] %v545_v2 }
  0xce   : > { %608 = vst [vmem:[%s1130_s25 + $0xc0] sm:$0xff] %v544_v3 }
  0xd1   : > { %v380_v5 = vpop.permute.xlu2 %379  ;;  %v350_v6 = vpop.permute.xlu1 %349 }
  0xd2   : > { %vm494_vm14 = vcmp.eq.s32.totalorder %v380_v5, %v1113_v12  ;;  %vm484_vm15 = vcmp.eq.s32.totalorder %v350_v6, %v1113_v12  ;;  %v347_v7 = vpop.permute.xlu0 %346 }
  0xd3   : > { %v558_v8 = vsel %vm494_vm14, 0.9003906, %v896_v17  ;;  %v548_v9 = vsel %vm484_vm15, 0.9003906, %v896_v17  ;;  %vm483_vm0 = vcmp.eq.s32.totalorder %v347_v7, %v1113_v12 }
  0xd4   : > { %622 = vst [vmem:[%s1130_s25 + $0x130] sm:$0xff] %v558_v8  ;;  %v547_v10 = vsel %vm483_vm0, 0.9003906, %v896_v17 }
  0xd5   : > { %612 = vst [vmem:[%s1130_s25 + $0xe0] sm:$0xff] %v548_v9 }
  0xd6   : > { %611 = vst [vmem:[%s1130_s25 + $0xd8] sm:$0xff] %v547_v10 }
  0xd9   : > { %v389_v11 = vpop.permute.xlu2 %388  ;;  %v359_v13 = vpop.permute.xlu1 %358 }
  0xda   : > { %vm497_vm1 = vcmp.eq.s32.totalorder %v389_v11, %v1113_v12  ;;  %vm487_vm2 = vcmp.eq.s32.totalorder %v359_v13, %v1113_v12  ;;  %v356_v14 = vpop.permute.xlu0 %355 }
  0xdb   : > { %v561_v15 = vsel %vm497_vm1, 0.9003906, %v896_v17  ;;  %v551_v16 = vsel %vm487_vm2, 0.9003906, %v896_v17  ;;  %vm486_vm3 = vcmp.eq.s32.totalorder %v356_v14, %v1113_v12 }
  0xdc   : > { %625 = vst [vmem:[%s1130_s25 + $0x148] sm:$0xff] %v561_v15  ;;  %v550_v18 = vsel %vm486_vm3, 0.9003906, %v896_v17 }
  0xdd   : > { %615 = vst [vmem:[%s1130_s25 + $0xf8] sm:$0xff] %v551_v16 }
  0xde   : > { %614 = vst [vmem:[%s1130_s25 + $0xf0] sm:$0xff] %v550_v18 }
  0xe1   : > { %v398_v19 = vpop.permute.xlu2 %397  ;;  %v368_v20 = vpop.permute.xlu1 %367 }
  0xe2   : > { %vm500_vm4 = vcmp.eq.s32.totalorder %v398_v19, %v1113_v12  ;;  %vm490_vm5 = vcmp.eq.s32.totalorder %v368_v20, %v1113_v12  ;;  %v365_v21 = vpop.permute.xlu0 %364 }
  0xe3   : > { %v564_v22 = vsel %vm500_vm4, 0.9003906, %v896_v17  ;;  %v554_v23 = vsel %vm490_vm5, 0.9003906, %v896_v17  ;;  %vm489_vm6 = vcmp.eq.s32.totalorder %v365_v21, %v1113_v12 }
  0xe4   : > { %628 = vst [vmem:[%s1130_s25 + $0x160] sm:$0xff] %v564_v22  ;;  %v553_v24 = vsel %vm489_vm6, 0.9003906, %v896_v17 }
  0xe5   : > { %618 = vst [vmem:[%s1130_s25 + $0x110] sm:$0xff] %v554_v23 }
  0xe6   : > { %617 = vst [vmem:[%s1130_s25 + $0x108] sm:$0xff] %v553_v24 }
  0xe9   : > { %v407_v25 = vpop.permute.xlu2 %406  ;;  %v377_v26 = vpop.permute.xlu1 %376 }
  0xea   : > { %vm503_vm7 = vcmp.eq.s32.totalorder %v407_v25, %v1113_v12  ;;  %vm493_vm8 = vcmp.eq.s32.totalorder %v377_v26, %v1113_v12  ;;  %v374_v27 = vpop.permute.xlu0 %373 }
  0xeb   : > { %v567_v28 = vsel %vm503_vm7, 0.9003906, %v896_v17  ;;  %v557_v29 = vsel %vm493_vm8, 0.9003906, %v896_v17  ;;  %vm492_vm9 = vcmp.eq.s32.totalorder %v374_v27, %v1113_v12 }
  0xec   : > { %631 = vst [vmem:[%s1130_s25 + $0x178] sm:$0xff] %v567_v28  ;;  %v556_v30 = vsel %vm492_vm9, 0.9003906, %v896_v17 }
  0xed   : > { %621 = vst [vmem:[%s1130_s25 + $0x128] sm:$0xff] %v557_v29 }
  0xee   : > { %620 = vst [vmem:[%s1130_s25 + $0x120] sm:$0xff] %v556_v30 }
  0xf1   : > { %v416_v31 = vpop.permute.xlu2 %415  ;;  %v386_v32 = vpop.permute.xlu1 %385 }
  0xf2   : > { %vm506_vm10 = vcmp.eq.s32.totalorder %v416_v31, %v1113_v12  ;;  %vm496_vm11 = vcmp.eq.s32.totalorder %v386_v32, %v1113_v12  ;;  %v383_v33 = vpop.permute.xlu0 %382 }
  0xf3   : > { %v570_v34 = vsel %vm506_vm10, 0.9003906, %v896_v17  ;;  %v560_v35 = vsel %vm496_vm11, 0.9003906, %v896_v17  ;;  %vm495_vm12 = vcmp.eq.s32.totalorder %v383_v33, %v1113_v12 }
  0xf4   : > { %634 = vst [vmem:[%s1130_s25 + $0x190] sm:$0xff] %v570_v34  ;;  %v559_v36 = vsel %vm495_vm12, 0.9003906, %v896_v17 }
  0xf5   : > { %624 = vst [vmem:[%s1130_s25 + $0x140] sm:$0xff] %v560_v35 }
  0xf6   : > { %623 = vst [vmem:[%s1130_s25 + $0x138] sm:$0xff] %v559_v36 }
  0xf9   : > { %v425_v37 = vpop.permute.xlu2 %424  ;;  %v395_v38 = vpop.permute.xlu1 %394 }
  0xfa   : > { %vm509_vm13 = vcmp.eq.s32.totalorder %v425_v37, %v1113_v12  ;;  %vm499_vm14 = vcmp.eq.s32.totalorder %v395_v38, %v1113_v12  ;;  %v392_v39 = vpop.permute.xlu0 %391 }
  0xfb   : > { %v573_v40 = vsel %vm509_vm13, 0.9003906, %v896_v17  ;;  %v563_v41 = vsel %vm499_vm14, 0.9003906, %v896_v17  ;;  %vm498_vm15 = vcmp.eq.s32.totalorder %v392_v39, %v1113_v12 }
  0xfc   : > { %637 = vst [vmem:[%s1130_s25 + $0x1a8] sm:$0xff] %v573_v40  ;;  %v562_v42 = vsel %vm498_vm15, 0.9003906, %v896_v17 }
  0xfd   : > { %627 = vst [vmem:[%s1130_s25 + $0x158] sm:$0xff] %v563_v41 }
  0xfe   : > { %626 = vst [vmem:[%s1130_s25 + $0x150] sm:$0xff] %v562_v42 }
 0x101   : > { %v434_v43 = vpop.permute.xlu2 %433  ;;  %v404_v44 = vpop.permute.xlu1 %403 }
 0x102   : > { %vm512_vm0 = vcmp.eq.s32.totalorder %v434_v43, %v1113_v12  ;;  %vm502_vm1 = vcmp.eq.s32.totalorder %v404_v44, %v1113_v12  ;;  %v401_v45 = vpop.permute.xlu0 %400 }
 0x103   : > { %v576_v46 = vsel %vm512_vm0, 0.9003906, %v896_v17  ;;  %v566_v47 = vsel %vm502_vm1, 0.9003906, %v896_v17  ;;  %vm501_vm2 = vcmp.eq.s32.totalorder %v401_v45, %v1113_v12 }
 0x104   : > { %640 = vst [vmem:[%s1130_s25 + $0x1c0] sm:$0xff] %v576_v46  ;;  %v565_v48 = vsel %vm501_vm2, 0.9003906, %v896_v17 }
 0x105   : > { %630 = vst [vmem:[%s1130_s25 + $0x170] sm:$0xff] %v566_v47 }
 0x106   : > { %629 = vst [vmem:[%s1130_s25 + $0x168] sm:$0xff] %v565_v48 }
 0x109   : > { %v443_v49 = vpop.permute.xlu2 %442  ;;  %v413_v50 = vpop.permute.xlu1 %412 }
 0x10a   : > { %vm515_vm3 = vcmp.eq.s32.totalorder %v443_v49, %v1113_v12  ;;  %vm505_vm4 = vcmp.eq.s32.totalorder %v413_v50, %v1113_v12  ;;  %v410_v51 = vpop.permute.xlu0 %409 }
 0x10b   : > { %v579_v52 = vsel %vm515_vm3, 0.9003906, %v896_v17  ;;  %v569_v53 = vsel %vm505_vm4, 0.9003906, %v896_v17  ;;  %vm504_vm5 = vcmp.eq.s32.totalorder %v410_v51, %v1113_v12 }
 0x10c   : > { %643 = vst [vmem:[%s1130_s25 + $0x1d8] sm:$0xff] %v579_v52  ;;  %v568_v54 = vsel %vm504_vm5, 0.9003906, %v896_v17 }
 0x10d   : > { %633 = vst [vmem:[%s1130_s25 + $0x188] sm:$0xff] %v569_v53 }
 0x10e   : > { %632 = vst [vmem:[%s1130_s25 + $0x180] sm:$0xff] %v568_v54 }
 0x111   : > { %v452_v55 = vpop.permute.xlu2 %451  ;;  %v422_v56 = vpop.permute.xlu1 %421 }
 0x112   : > { %vm518_vm6 = vcmp.eq.s32.totalorder %v452_v55, %v1113_v12  ;;  %vm508_vm7 = vcmp.eq.s32.totalorder %v422_v56, %v1113_v12  ;;  %v419_v57 = vpop.permute.xlu0 %418 }
 0x113   : > { %v582_v58 = vsel %vm518_vm6, 0.9003906, %v896_v17  ;;  %v572_v59 = vsel %vm508_vm7, 0.9003906, %v896_v17  ;;  %vm507_vm8 = vcmp.eq.s32.totalorder %v419_v57, %v1113_v12 }
 0x114   : > { %646 = vst [vmem:[%s1130_s25 + $0x1f0] sm:$0xff] %v582_v58  ;;  %v571_v60 = vsel %vm507_vm8, 0.9003906, %v896_v17 }
 0x115   : > { %636 = vst [vmem:[%s1130_s25 + $0x1a0] sm:$0xff] %v572_v59 }
 0x116   : > { %635 = vst [vmem:[%s1130_s25 + $0x198] sm:$0xff] %v571_v60 }
 0x119   : > { %v431_v61 = vpop.permute.xlu1 %430 }
 0x11a   : > { %vm511_vm9 = vcmp.eq.s32.totalorder %v431_v61, %v1113_v12  ;;  %v428_v4 = vpop.permute.xlu0 %427 }
 0x11b   : > { %v575_v62 = vsel %vm511_vm9, 0.9003906, %v896_v17  ;;  %vm510_vm10 = vcmp.eq.s32.totalorder %v428_v4, %v1113_v12 }
 0x11c   : > { %639 = vst [vmem:[%s1130_s25 + $0x1b8] sm:$0xff] %v575_v62  ;;  %v574_v63 = vsel %vm510_vm10, 0.9003906, %v896_v17 }
 0x11d   : > { %638 = vst [vmem:[%s1130_s25 + $0x1b0] sm:$0xff] %v574_v63 }
 0x121   : > { %v440_v0 = vpop.permute.xlu1 %439 }
 0x122   : > { %vm514_vm11 = vcmp.eq.s32.totalorder %v440_v0, %v1113_v12  ;;  %v437_v1 = vpop.permute.xlu0 %436 }
 0x123   : > { %v578_v2 = vsel %vm514_vm11, 0.9003906, %v896_v17  ;;  %vm513_vm12 = vcmp.eq.s32.totalorder %v437_v1, %v1113_v12 }
 0x124   : > { %642 = vst [vmem:[%s1130_s25 + $0x1d0] sm:$0xff] %v578_v2  ;;  %v577_v3 = vsel %vm513_vm12, 0.9003906, %v896_v17 }
 0x125   : > { %641 = vst [vmem:[%s1130_s25 + $0x1c8] sm:$0xff] %v577_v3 }
 0x129   : > { %v449_v5 = vpop.permute.xlu1 %448 }
 0x12a   : > { %vm517_vm13 = vcmp.eq.s32.totalorder %v449_v5, %v1113_v12  ;;  %v446_v6 = vpop.permute.xlu0 %445 }
 0x12b   : > { %v581_v7 = vsel %vm517_vm13, 0.9003906, %v896_v17  ;;  %vm516_vm14 = vcmp.eq.s32.totalorder %v446_v6, %v1113_v12 }
 0x12c   : > { %645 = vst [vmem:[%s1130_s25 + $0x1e8] sm:$0xff] %v581_v7  ;;  %v580_v8 = vsel %vm516_vm14, 0.9003906, %v896_v17 }
 0x12d   : > { %644 = vst [vmem:[%s1130_s25 + $0x1e0] sm:$0xff] %v580_v8 }
 0x132   : > { %v455_v9 = vpop.permute.xlu0 %454 }
 0x133   : > { %vm519_vm15 = vcmp.eq.s32.totalorder %v455_v9, %v1113_v12 }
 0x134   : > { %v583_v10 = vsel %vm519_vm15, 0.9003906, %v896_v17 }
 0x135   : > { %647 = vst [vmem:[%s1130_s25 + $0x1f8] sm:$0xff] %v583_v10 }
 0x136   : > { %842 = shalt.err (!%p839_p3)
}
 0x137   : > { %s897_s13 = smov 128   ;;  %s898_s25 = smov 256  }
 0x138   : > { %s899_s20 = smov 8  }
 0x139   : > { %752 = dma.vmem_to_hbm [thread:$0]  (%p950_p4), %s664_s29, 8192, %s666_s9, %s649_s30, %s897_s13, %s898_s25, %s899_s20  }
 0x13a PF: > { %p758_p5 = scmp.ge.s32.totalorder %s893_s11, 2  ;;  %s680_s21 = sand.u32 1, %s873_s6  }
 0x13b   : > { %s681_s22 = scalar_lea.sflag [#allocation3], %s680_s21 }
 0x13c   : > { %p755_p6 = pnand %p758_p5, %p957_p8 }
 0x13e   : > { %p756_p7 = pneg %p755_p6 }
 0x140   : > { %868 = dma.done.wait (%p756_p7), %s681_s22, 8192  }
 0x141   : > { %870 = vsyncadd (%p756_p7), %s681_s22, 4294959104  ;;  %s14_s11 = sadd.s32 1, %s893_s11   ;;  %s1466_s6 = smov %s877_s7 }
 0x142   : > { %p11_p9 = scmp.ge.s32.totalorder %s14_s11, 4   ;;  %s1467_s7 = smov %s881_s8 }
 0x143   : > { %s1468_s8 = smov %s963_s19  ;;  %s1469_s9 = smov %s889_s10 }
 0x144   : > { %s1470_s10 = smov %s1472_s14  ;;  %13 = sbr.rel (!%p11_p9) target bundleno = 4 (0x4), region = 59 }
 0x149   :  { %687 = vsyncpa [#allocation3], 1 }
 0x14a   :  { %689 = vsyncpa [#allocation3 + $0x1], 1 }

</bundles_post_ra>
